<compile_context>
chip_gen: v7x
topology: tpu7x:2x2x1
jax: 0.10.0
libtpu: 0.0.40
codegen_flags: <defaults>
</compile_context>

<pallas_src>
import math

import jax
import jax.numpy as jnp
from jax.experimental import pallas as pl
from jax.experimental.pallas import tpu as pltpu


def _mlp_select_kernel(x_ref, w1_ref, b1_ref, w2c_ref, b2_ref, o_ref):
    # Hidden layer: bf16 (TB, D) @ bf16 (D, H) on the MXU with f32 accumulation,
    # bias-add + ReLU in f32 on the VPU.
    h = jnp.dot(x_ref[...], w1_ref[...], preferred_element_type=jnp.float32)
    h = jnp.maximum(h + b1_ref[...], 0.0)
    # Output layer restricted to the selected class: f32 (TB, H) @ (H, 1) + scalar.
    o_ref[...] = (
        jnp.dot(h, w2c_ref[...], preferred_element_type=jnp.float32) + b2_ref[...]
    )


def model_wrapper_forward(x_nchw, w1, b1, w2, b2, *, target_class: int = 0):
    """Equivalent of ModelWrapper(model, target_class)(x)."""
    B = x_nchw.shape[0]
    d_in = math.prod(x_nchw.shape[1:])
    hidden = w1.shape[1]

    # Glue (outside the kernel): flatten NCHW row-major (torch.flatten semantics),
    # cast the big matmul operands to bf16, and pre-slice the output layer to the
    # target class so the kernel never computes the other logits.
    x2d = x_nchw.reshape(B, d_in).astype(jnp.bfloat16)
    w1b = w1.astype(jnp.bfloat16)
    b1r = b1.reshape(1, hidden).astype(jnp.float32)
    w2c = w2[:, target_class:target_class + 1].astype(jnp.float32)   # (H, 1)
    b2s = b2[target_class].reshape(1, 1).astype(jnp.float32)         # (1, 1)

    # Batch tiling: whole batch in one block when small; MXU-sized 256-row tiles
    # (parallel grid axis -> sharded across TensorCores on v7x) when large.
    TB = 256 if B >= 256 else B
    Bp = ((B + TB - 1) // TB) * TB
    if Bp != B:
        x2d = jnp.pad(x2d, ((0, Bp - B), (0, 0)))

    cost = pl.CostEstimate(
        flops=2 * Bp * d_in * hidden + 2 * Bp * hidden,
        transcendentals=0,
        bytes_accessed=(x2d.size * 2 + w1b.size * 2
                        + (b1r.size + w2c.size + b2s.size + Bp) * 4),
    )

    out = pl.pallas_call(
        _mlp_select_kernel,
        out_shape=jax.ShapeDtypeStruct((Bp, 1), jnp.float32),
        grid=(Bp // TB,),
        in_specs=[
            pl.BlockSpec((TB, d_in), lambda i: (i, 0)),       # x: tiled over batch
            pl.BlockSpec((d_in, hidden), lambda i: (0, 0)),   # w1: VMEM-resident
            pl.BlockSpec((1, hidden), lambda i: (0, 0)),      # b1
            pl.BlockSpec((hidden, 1), lambda i: (0, 0)),      # w2 column (target class)
            pl.BlockSpec((1, 1), lambda i: (0, 0)),           # b2 scalar
        ],
        out_specs=pl.BlockSpec((TB, 1), lambda i: (i, 0)),
        compiler_params=pltpu.CompilerParams(
            dimension_semantics=("parallel",),
        ),
        cost_estimate=cost,
    )(x2d, w1b, b1r, w2c, b2s)

    return out[:B, 0]  # (B,) — matches torch's output[:, target_class]


if __name__ == "__main__":
    # Small shapes consistent with the forward pass.
    B, C, H, W = 2, 4, 16, 16
    D_IN = C * H * W          # 1024
    HIDDEN = 32
    NUM_CLASSES = 10
    TARGET_CLASS = 0

    key = jax.random.PRNGKey(0)
    kx, k1, k2, k3, k4 = jax.random.split(key, 5)

    x = jax.random.normal(kx, (B, C, H, W), dtype=jnp.float32)
    w1 = jax.random.normal(k1, (D_IN, HIDDEN), dtype=jnp.float32) * 0.02
    b1 = jax.random.normal(k2, (HIDDEN,), dtype=jnp.float32) * 0.02
    w2 = jax.random.normal(k3, (HIDDEN, NUM_CLASSES), dtype=jnp.float32) * 0.02
    b2 = jax.random.normal(k4, (NUM_CLASSES,), dtype=jnp.float32) * 0.02

    y = model_wrapper_forward(x, w1, b1, w2, b2, target_class=TARGET_CLASS)
    y = jax.block_until_ready(y)

    # Pure-JAX f32 reference of the same forward pass (tolerance relaxed for bf16 inputs).
    x2d = x.reshape(B, -1)
    ref = jnp.maximum(x2d @ w1 + b1, 0.0) @ w2 + b2
    ref = ref[:, TARGET_CLASS]
    assert y.shape == (B,)
    assert jnp.allclose(y, ref, atol=1e-2, rtol=1e-2)

    print("KERNEL_OK")
</pallas_src>

<mosaic_0001>
module attributes {stable_mosaic.version = 11 : i64} {
  func.func @_mlp_select_kernel(%arg0: i32, %arg1: memref<2x1024xbf16, #tpu.memory_space<vmem>>, %arg2: memref<1024x32xbf16, #tpu.memory_space<vmem>>, %arg3: memref<1x32xf32, #tpu.memory_space<vmem>>, %arg4: memref<32x1xf32, #tpu.memory_space<vmem>>, %arg5: memref<1x1xf32, #tpu.memory_space<vmem>>, %arg6: memref<2x1xf32, #tpu.memory_space<vmem>>) attributes {dimension_semantics = [#tpu.dimension_semantics<parallel>], iteration_bounds = array<i64: 1>, scalar_prefetch = 0 : i64, scratch_operands = 0 : i64, tpu.core_type = #tpu.core_type<tc>, window_params = [{transform_indices = @transform_0, window_bounds = array<i64: 2, 1024>}, {pipeline_mode = #tpu.pipeline_mode<synchronous>, transform_indices = @transform_1, window_bounds = array<i64: 1024, 32>}, {pipeline_mode = #tpu.pipeline_mode<synchronous>, transform_indices = @transform_2, window_bounds = array<i64: 1, 32>}, {pipeline_mode = #tpu.pipeline_mode<synchronous>, transform_indices = @transform_3, window_bounds = array<i64: 32, 1>}, {pipeline_mode = #tpu.pipeline_mode<synchronous>, transform_indices = @transform_4, window_bounds = array<i64: 1, 1>}, {transform_indices = @transform_5, window_bounds = array<i64: 2, 1>}]} {
    %c0 = arith.constant 0 : index
    %c0_0 = arith.constant 0 : index
    %0 = vector.load %arg1[%c0, %c0_0] : memref<2x1024xbf16, #tpu.memory_space<vmem>>, vector<2x1024xbf16>
    %c0_1 = arith.constant 0 : index
    %c0_2 = arith.constant 0 : index
    %1 = vector.load %arg2[%c0_1, %c0_2] : memref<1024x32xbf16, #tpu.memory_space<vmem>>, vector<1024x32xbf16>
    %cst = arith.constant dense<0.000000e+00> : vector<2x32xf32>
    %2 = tpu.matmul %0, %1, %cst {dimension_numbers = #tpu.dot_dimension_numbers<[1], [0], [0], [1], [0, 0, 1, 1], [], []>} : vector<2x1024xbf16>, vector<1024x32xbf16>, vector<2x32xf32> -> vector<2x32xf32>
    %c0_3 = arith.constant 0 : index
    %c0_4 = arith.constant 0 : index
    %3 = vector.load %arg3[%c0_3, %c0_4] : memref<1x32xf32, #tpu.memory_space<vmem>>, vector<1x32xf32>
    %4 = vector.broadcast %3 : vector<1x32xf32> to vector<2x32xf32>
    %5 = arith.addf %2, %4 : vector<2x32xf32>
    %cst_5 = arith.constant 0.000000e+00 : f32
    %6 = vector.broadcast %cst_5 : f32 to vector<2x32xf32>
    %7 = arith.maximumf %5, %6 : vector<2x32xf32>
    %c0_6 = arith.constant 0 : index
    %c0_7 = arith.constant 0 : index
    %8 = vector.load %arg4[%c0_6, %c0_7] : memref<32x1xf32, #tpu.memory_space<vmem>>, vector<32x1xf32>
    %cst_8 = arith.constant dense<0.000000e+00> : vector<2x1xf32>
    %9 = tpu.matmul %7, %8, %cst_8 {dimension_numbers = #tpu.dot_dimension_numbers<[1], [0], [0], [1], [0, 0, 1, 1], [], []>} : vector<2x32xf32>, vector<32x1xf32>, vector<2x1xf32> -> vector<2x1xf32>
    %c0_9 = arith.constant 0 : index
    %c0_10 = arith.constant 0 : index
    %10 = vector.load %arg5[%c0_9, %c0_10] : memref<1x1xf32, #tpu.memory_space<vmem>>, vector<1x1xf32>
    %11 = vector.broadcast %10 : vector<1x1xf32> to vector<2x1xf32>
    %12 = arith.addf %9, %11 : vector<2x1xf32>
    %c0_11 = arith.constant 0 : index
    %c0_12 = arith.constant 0 : index
    %13 = vector.load %arg6[%c0_11, %c0_12] : memref<2x1xf32, #tpu.memory_space<vmem>>, vector<2x1xf32>
    tpu.vector_store %arg6[%c0_11, %c0_12], %12 {strides = array<i32>} : memref<2x1xf32, #tpu.memory_space<vmem>>, vector<2x1xf32>,
    return
  }
  func.func @transform_0(%arg0: i32) -> (i32, i32) {
    %c0_i32 = arith.constant 0 : i32
    %c0_i32_0 = arith.constant 0 : i32
    return %arg0, %c0_i32 : i32, i32
  }
  func.func @transform_1(%arg0: i32) -> (i32, i32) {
    %c0_i32 = arith.constant 0 : i32
    %c0_i32_0 = arith.constant 0 : i32
    %c0_i32_1 = arith.constant 0 : i32
    return %c0_i32, %c0_i32_0 : i32, i32
  }
  func.func @transform_2(%arg0: i32) -> (i32, i32) {
    %c0_i32 = arith.constant 0 : i32
    %c0_i32_0 = arith.constant 0 : i32
    %c0_i32_1 = arith.constant 0 : i32
    return %c0_i32, %c0_i32_0 : i32, i32
  }
  func.func @transform_3(%arg0: i32) -> (i32, i32) {
    %c0_i32 = arith.constant 0 : i32
    %c0_i32_0 = arith.constant 0 : i32
    %c0_i32_1 = arith.constant 0 : i32
    return %c0_i32, %c0_i32_0 : i32, i32
  }
  func.func @transform_4(%arg0: i32) -> (i32, i32) {
    %c0_i32 = arith.constant 0 : i32
    %c0_i32_0 = arith.constant 0 : i32
    %c0_i32_1 = arith.constant 0 : i32
    return %c0_i32, %c0_i32_0 : i32, i32
  }
  func.func @transform_5(%arg0: i32) -> (i32, i32) {
    %c0_i32 = arith.constant 0 : i32
    %c0_i32_0 = arith.constant 0 : i32
    return %arg0, %c0_i32 : i32, i32
  }
}

</mosaic_0001>

<bundles_post_ra>
// kernel: tpu_custom_call.1
= control target key start
LH: loop header
LB: loop body
LE: loop exit
PB: predicated region body
PF: predicated region fallthrough
CT: control target
= control target key end

     0   :  { %v1099_v22 = vmov 1966171168   ;;  %v164_v24 = vlaneseq  ;;  %vm1101_vm0 = vmmov 0   ;;  %vm773_vm1 = vcmask 261120   ;;  %s1362_s1 = inlined_call_operand.vmem [shape: bf16[1024,32], index: 1, kind: input, shape index: {}]   ;;  %s1363_s0 = inlined_call_operand.vmem [shape: bf16[2,1024], index: 0, kind: input, shape index: {}]   ;;  %s1364_s3 = inlined_call_operand.vmem [shape: f32[32,1], index: 3, kind: input, shape index: {}]   ;;  %s1365_s4 = inlined_call_operand.<no memory space> [shape: f32[1,1], index: 4, kind: input, shape index: {}]   ;;  %s1366_s2 = inlined_call_operand.vmem [shape: f32[1,32], index: 2, kind: input, shape index: {}]   ;;  %s1367_s5 = inlined_call_operand.vmem [shape: f32[2,1], index: 5, kind: output, shape index: {}]  }
   0x1   :  { %v1034_v0 = vld [vmem:[%s1362_s1 + $0x40] sm:$0xff]   ;;  %v1038_v4 = vld [vmem:[%s1362_s1 + $0x48] sm:$0xff]   ;;  %v1042_v8 = vld [vmem:[%s1362_s1 + $0x50] sm:$0xff]   ;;  %v162_v23 = vunpack.c.l.s4 %v1099_v22  ;;  %vm847_vm2 = vcmask 1024  }
   0x2   :  { %v1035_v1 = vld [vmem:[%s1362_s1 + $0xc0] sm:$0xff]   ;;  %920 = vmatprep.subr.bf16.mxu0 %v1034_v0  ;;  %v1039_v5 = vld [vmem:[%s1362_s1 + $0xc8] sm:$0xff]   ;;  %v1043_v9 = vld [vmem:[%s1362_s1 + $0xd0] sm:$0xff]   ;;  %v165_v30 = vshrl.u32 %v164_v24, 7 }
   0x3   :  { %v1036_v2 = vld [vmem:[%s1362_s1] sm:$0xff]   ;;  %942 = vmatprep.subr.bf16.mxu1 %v1035_v1  ;;  %v1040_v6 = vld [vmem:[%s1362_s1 + $0x8] sm:$0xff]   ;;  %v1044_v10 = vld [vmem:[%s1362_s1 + $0x10] sm:$0xff]   ;;  %v163_v29 = vunpack.c.0.s8 %v162_v23  ;;  %v1100_v23 = vmov 0.0|0.0  }
   0x4   :  { %v1037_v3 = vld [vmem:[%s1362_s1 + $0x80] sm:$0xff]   ;;  %921 = vmatpush3.bf16.msra.mxu0 %v1036_v2  ;;  %v1041_v7 = vld [vmem:[%s1362_s1 + $0x88] sm:$0xff]   ;;  %v1045_v11 = vld [vmem:[%s1362_s1 + $0x90] sm:$0xff]  }
   0x5   :  { %943 = vmatpush3.bf16.msra.mxu1 %v1037_v3  ;;  %922 = vmatprep.subr.bf16.mxu0 %v1038_v4  ;;  %v1046_v12 = vld [vmem:[%s1362_s1 + $0x58] sm:$0xff]   ;;  %v1050_v16 = vld [vmem:[%s1362_s1 + $0x60] sm:$0xff]   ;;  %v1054_v20 = vld [vmem:[%s1362_s1 + $0x68] sm:$0xff]   ;;  %v1223_v35 = vsub.s32 %v163_v29, %v165_v30 }
   0x6   :  { %944 = vmatprep.subr.bf16.mxu1 %v1039_v5  ;;  %v1047_v13 = vld [vmem:[%s1362_s1 + $0xd8] sm:$0xff]   ;;  %v1051_v17 = vld [vmem:[%s1362_s1 + $0xe0] sm:$0xff]   ;;  %v1055_v21 = vld [vmem:[%s1362_s1 + $0xe8] sm:$0xff]  }
   0x7   :  { %v1048_v14 = vld [vmem:[%s1362_s1 + $0x18] sm:$0xff]   ;;  %v1052_v18 = vld [vmem:[%s1362_s1 + $0x20] sm:$0xff]   ;;  %v1056_v25 = vld [vmem:[%s1362_s1 + $0x28] sm:$0xff]  }
   0x8   :  { %923 = vmatpush3.bf16.msra.mxu0 %v1040_v6  ;;  %v1049_v15 = vld [vmem:[%s1362_s1 + $0x98] sm:$0xff]   ;;  %v1053_v19 = vld [vmem:[%s1362_s1 + $0xa0] sm:$0xff]   ;;  %v1057_v26 = vld [vmem:[%s1362_s1 + $0xa8] sm:$0xff]  }
   0x9   :  { %945 = vmatpush3.bf16.msra.mxu1 %v1041_v7  ;;  %924 = vmatprep.subr.bf16.mxu0 %v1042_v8  ;;  %v1058_v27 = vld [vmem:[%s1362_s1 + $0x70] sm:$0xff]   ;;  %v1062_v33 = vld [vmem:[%s1362_s1 + $0x78] sm:$0xff]   ;;  %v23_v38 = vld [vmem:[%s1363_s0] sm:$0xff] }
   0xa   :  { %946 = vmatprep.subr.bf16.mxu1 %v1043_v9  ;;  %v1059_v28 = vld [vmem:[%s1362_s1 + $0xf0] sm:$0xff]   ;;  %v1063_v34 = vld [vmem:[%s1362_s1 + $0xf8] sm:$0xff]   ;;  %v160_v39 = vcombine.high %v23_v38, %v23_v38  ;;  %v167_v40 = vrot.slane %v23_v38, %v1223_v35  ;;  %v1067_v41 = vld [vmem:[%s1362_s1 + $0x140] sm:$0xff]  }
   0xb   :  { %v1060_v31 = vld [vmem:[%s1362_s1 + $0x30] sm:$0xff]   ;;  %v1064_v36 = vld [vmem:[%s1362_s1 + $0x38] sm:$0xff]   ;;  %v1068_v42 = vld [vmem:[%s1362_s1 + $0x1c0] sm:$0xff]  }
   0xc   :  { %925 = vmatpush3.bf16.msra.mxu0 %v1044_v10  ;;  %v1061_v32 = vld [vmem:[%s1362_s1 + $0xb0] sm:$0xff]   ;;  %v1065_v37 = vld [vmem:[%s1362_s1 + $0xb8] sm:$0xff]   ;;  %v175_v43 = vcombine.high %v167_v40, %v167_v40  ;;  %v183_v44 = vrot.slane %v167_v40, %v1223_v35  ;;  %v1243_v45 = vrot.slane %v160_v39, %v1223_v35  ;;  %v1069_v47 = vld [vmem:[%s1362_s1 + $0x100] sm:$0xff]  }
   0xd   :  { %947 = vmatpush3.bf16.msra.mxu1 %v1045_v11  ;;  %926 = vmatprep.subr.bf16.mxu0 %v1046_v12  ;;  %v1071_v50 = vld [vmem:[%s1362_s1 + $0x148] sm:$0xff]   ;;  %v1070_v52 = vld [vmem:[%s1362_s1 + $0x180] sm:$0xff]   ;;  %v1075_v57 = vld [vmem:[%s1362_s1 + $0x150] sm:$0xff]  }
   0xe   :  { %948 = vmatprep.subr.bf16.mxu1 %v1047_v13  ;;  %v197_v46 = vrot.slane %v175_v43, %v1223_v35  ;;  %v176_v48 = vcombine.high %v1243_v45, %v1243_v45  ;;  %v205_v49 = vcombine.high %v183_v44, %v183_v44  ;;  %v1072_v54 = vld [vmem:[%s1362_s1 + $0x1c8] sm:$0xff]   ;;  %v1076_v59 = vld [vmem:[%s1362_s1 + $0x1d0] sm:$0xff]   ;;  %v1079_v61 = vld [vmem:[%s1362_s1 + $0x158] sm:$0xff]  }
   0xf   :  { %v1073_v55 = vld [vmem:[%s1362_s1 + $0x108] sm:$0xff]   ;;  %v1077_v60 = vld [vmem:[%s1362_s1 + $0x110] sm:$0xff]   ;;  %v1080_v63 = vld [vmem:[%s1362_s1 + $0x1d8] sm:$0xff]  }
  0x10   :  { %927 = vmatpush3.bf16.msra.mxu0 %v1048_v14  ;;  %633 = vmatprep.mubr.bf16.mxu0 %v197_v46  ;;  %v207_v51 = vcombine.high %v197_v46, %v197_v46  ;;  %v204_v53 = vrot.slane %v176_v48, %v1223_v35  ;;  %v1074_v58 = vld [vmem:[%s1362_s1 + $0x188] sm:$0xff]   ;;  %v1078_v62 = vld [vmem:[%s1362_s1 + $0x190] sm:$0xff]   ;;  %v1081_v0 = vld [vmem:[%s1362_s1 + $0x118] sm:$0xff]  }
  0x11   :  { %949 = vmatpush3.bf16.msra.mxu1 %v1049_v15  ;;  %928 = vmatprep.subr.bf16.mxu0 %v1050_v16  ;;  %v1083_v1 = vld [vmem:[%s1362_s1 + $0x160] sm:$0xff]   ;;  %v1082_v2 = vld [vmem:[%s1362_s1 + $0x198] sm:$0xff]   ;;  %v1087_v5 = vld [vmem:[%s1362_s1 + $0x168] sm:$0xff]  }
  0x12   :  { %950 = vmatprep.subr.bf16.mxu1 %v1051_v17  ;;  %673 = vmatprep.mubr.bf16.mxu1 %v207_v51  ;;  %v208_v56 = vcombine.high %v204_v53, %v204_v53  ;;  %v1084_v3 = vld [vmem:[%s1362_s1 + $0x1e0] sm:$0xff]   ;;  %v1088_v7 = vld [vmem:[%s1362_s1 + $0x1e8] sm:$0xff]   ;;  %v1091_v9 = vld [vmem:[%s1362_s1 + $0x170] sm:$0xff]   ;;  %v190_v17 = vrot.slane %v1243_v45, %v1223_v35 }
  0x13   :  { %v1085_v4 = vld [vmem:[%s1362_s1 + $0x120] sm:$0xff]   ;;  %v1089_v8 = vld [vmem:[%s1362_s1 + $0x128] sm:$0xff]   ;;  %v1092_v11 = vld [vmem:[%s1362_s1 + $0x1f0] sm:$0xff]  }
  0x14   :  { %929 = vmatpush3.bf16.msra.mxu0 %v1052_v18  ;;  %v1086_v6 = vld [vmem:[%s1362_s1 + $0x1a0] sm:$0xff]   ;;  %v1090_v10 = vld [vmem:[%s1362_s1 + $0x1a8] sm:$0xff]   ;;  %v1093_v12 = vld [vmem:[%s1362_s1 + $0x130] sm:$0xff]  }
  0x15   :  { %951 = vmatpush3.bf16.msra.mxu1 %v1053_v19  ;;  %930 = vmatprep.subr.bf16.mxu0 %v1054_v20  ;;  %v1095_v13 = vld [vmem:[%s1362_s1 + $0x178] sm:$0xff]   ;;  %v1094_v14 = vld [vmem:[%s1362_s1 + $0x1b0] sm:$0xff]   ;;  %v206_v19 = vcombine.high %v190_v17, %v190_v17  ;;  %v762_v20 = vld [vmem:[%s1364_s3] sm:$0xff] }
  0x16   :  { %952 = vmatprep.subr.bf16.mxu1 %v1055_v21  ;;  %v1096_v15 = vld [vmem:[%s1362_s1 + $0x1f8] sm:$0xff]   ;;  %v763_v21 = vld [vmem:[%s1364_s3 + $0x8] sm:$0xff]  ;;  %v764_v24 = vld [vmem:[%s1364_s3 + $0x10] sm:$0xff] }
  0x17   :  { %v1097_v16 = vld [vmem:[%s1362_s1 + $0x138] sm:$0xff]   ;;  %v1025_v22 = vpack.c.bf16 %v763_v21, %v762_v20  ;;  %v853_v30 = vld [vmem:[%s1366_s2] ss:$0 sm:$0xff] }
  0x18   :  { %931 = vmatpush3.bf16.msra.mxu0 %v1056_v25  ;;  %v1098_v18 = vld [vmem:[%s1362_s1 + $0x1b8] sm:$0xff]  }
  0x19   :  { %953 = vmatpush3.bf16.msra.mxu1 %v1057_v26  ;;  %932 = vmatprep.subr.bf16.mxu0 %v1058_v27  ;;  %v765_v25 = vld [vmem:[%s1364_s3 + $0x18] sm:$0xff]  ;;  %v1102_v27 = vmov 0.0  }
  0x1a   :  { %954 = vmatprep.subr.bf16.mxu1 %v1059_v28  ;;  %v1028_v26 = vpack.c.bf16 %v765_v25, %v764_v24  ;;  %v10_v28 = vstv %s1365_s4 }
  0x1b   :  { %11 = vst [vmem:[#allocation2] sm:$0x1] %v10_v28 }
  0x1c   :  { %933 = vmatpush3.bf16.msra.mxu0 %v1060_v31 }
  0x1d   :  { %955 = vmatpush3.bf16.msra.mxu1 %v1061_v32  ;;  %934 = vmatprep.subr.bf16.mxu0 %v1062_v33 }
  0x1e   :  { %956 = vmatprep.subr.bf16.mxu1 %v1063_v34 }
  0x20   :  { %935 = vmatpush3.bf16.msra.mxu0 %v1064_v36 }
  0x21   :  { %957 = vmatpush3.bf16.msra.mxu1 %v1065_v37  ;;  %964 = vmatprep.subr.bf16.mxu0 %v1067_v41 }
  0x22   :  { %986 = vmatprep.subr.bf16.mxu1 %v1068_v42 }
  0x23   :  { %634 = vmatmul.mubr.bf16.vlgmr.msra.gmra.mrb[0].mxu0 %v183_v44 }
  0x24   :  { %965 = vmatpush3.bf16.msra.mxu0 %v1069_v47  ;;  %674 = vmatmul.mubr.bf16.vlgmr.msra.gmra.mrb[0].mxu1 %v205_v49 }
  0x25   :  { %966 = vmatprep.subr.bf16.mxu0 %v1071_v50  ;;  %987 = vmatpush3.bf16.msra.mxu1 %v1070_v52 }
  0x26   :  { %713 = vmatprep.mubr.bf16.mxu0 %v204_v53  ;;  %988 = vmatprep.subr.bf16.mxu1 %v1072_v54 }
  0x27   :  { %753 = vmatprep.mubr.bf16.mxu1 %v208_v56 }
  0x28   :  { %967 = vmatpush3.bf16.msra.mxu0 %v1073_v55  ;;  %v918_v55 = vld [vmem:[#allocation2] ss:$0 sm:$0xff] }
  0x29   :  { %968 = vmatprep.subr.bf16.mxu0 %v1075_v57  ;;  %989 = vmatpush3.bf16.msra.mxu1 %v1074_v58 }
  0x2a   :  { %990 = vmatprep.subr.bf16.mxu1 %v1076_v59 }
  0x2c   :  { %969 = vmatpush3.bf16.msra.mxu0 %v1077_v60 }
  0x2d   :  { %970 = vmatprep.subr.bf16.mxu0 %v1079_v61  ;;  %991 = vmatpush3.bf16.msra.mxu1 %v1078_v62 }
  0x2e   :  { %992 = vmatprep.subr.bf16.mxu1 %v1080_v63 }
  0x30   :  { %971 = vmatpush3.bf16.msra.mxu0 %v1081_v0 }
  0x31   :  { %972 = vmatprep.subr.bf16.mxu0 %v1083_v1  ;;  %993 = vmatpush3.bf16.msra.mxu1 %v1082_v2 }
  0x32   :  { %994 = vmatprep.subr.bf16.mxu1 %v1084_v3 }
  0x34   :  { %973 = vmatpush3.bf16.msra.mxu0 %v1085_v4 }
  0x35   :  { %974 = vmatprep.subr.bf16.mxu0 %v1087_v5  ;;  %995 = vmatpush3.bf16.msra.mxu1 %v1086_v6 }
  0x36   :  { %996 = vmatprep.subr.bf16.mxu1 %v1088_v7 }
  0x38   :  { %975 = vmatpush3.bf16.msra.mxu0 %v1089_v8 }
  0x39   :  { %976 = vmatprep.subr.bf16.mxu0 %v1091_v9  ;;  %997 = vmatpush3.bf16.msra.mxu1 %v1090_v10 }
  0x3a   :  { %998 = vmatprep.subr.bf16.mxu1 %v1092_v11 }
  0x3c   :  { %977 = vmatpush3.bf16.msra.mxu0 %v1093_v12 }
  0x3d   :  { %978 = vmatprep.subr.bf16.mxu0 %v1095_v13  ;;  %999 = vmatpush3.bf16.msra.mxu1 %v1094_v14 }
  0x3e   :  { %1000 = vmatprep.subr.bf16.mxu1 %v1096_v15 }
  0x40   :  { %979 = vmatpush3.bf16.msra.mxu0 %v1097_v16 }
  0x41   :  { %1001 = vmatpush3.bf16.msra.mxu1 %v1098_v18  ;;  %1024 = vmatprep.subr.bf16.mxu0 %v1100_v23 }
  0x43   :  { %714 = vmatmul.mubr.bf16.vlgmr.msra.gmra.mrb[4].mxu0 %v190_v17 }
  0x44   :  { %754 = vmatmul.mubr.bf16.vlgmr.msra.gmra.mrb[4].mxu1 %v206_v19  ;;  %1026 = vmatpush3.bf16.msra.mxu0 %v1025_v22 }
  0x45   :  { %1027 = vmatprep.subr.bf16.mxu0 %v1100_v23  ;;  %1021 = vmatprep.mubr.msk.f32.mxu0 %vm1101_vm0, %v1102_v27 }
  0x48   :  { %1029 = vmatpush3.bf16.msra.mxu0 %v1028_v26 }
  0xf6   :  { %v936_v29 = vpop.f32.mrb[0].mxu0 }
  0xf7   :  { %v937_v31 = vpop.f32.mrb[1].mxu0  ;;  %v958_v32 = vpop.f32.mrb[0].mxu1 }
  0xf8   :  { %v938_v33 = vadd.f32 %v937_v31, %v936_v29  ;;  %v939_v34 = vpop.f32.mrb[2].mxu0  ;;  %v959_v35 = vpop.f32.mrb[1].mxu1 }
  0xf9   :  { %v940_v36 = vpop.f32.mrb[3].mxu0  ;;  %v960_v38 = vadd.f32 %v959_v35, %v958_v32  ;;  %v961_v39 = vpop.f32.mrb[2].mxu1 }
  0xfa   :  { %v636_v37 = vadd.f32 %v938_v33, %v853_v30  ;;  %v962_v40 = vpop.f32.mrb[3].mxu1 }
  0xfc   :  { %v676_v41 = vadd.f32 %v960_v38, %v636_v37 }
 0x116   :  { %v980_v42 = vpop.f32.mrb[4].mxu0 }
 0x117   :  { %v981_v43 = vpop.f32.mrb[5].mxu0  ;;  %v1002_v44 = vpop.f32.mrb[4].mxu1 }
 0x118   :  { %v982_v45 = vadd.f32 %v981_v43, %v980_v42  ;;  %v983_v46 = vpop.f32.mrb[6].mxu0  ;;  %v1003_v47 = vpop.f32.mrb[5].mxu1 }
 0x119   :  { %v984_v48 = vpop.f32.mrb[7].mxu0  ;;  %v1004_v50 = vadd.f32 %v1003_v47, %v1002_v44  ;;  %v1005_v51 = vpop.f32.mrb[6].mxu1 }
 0x11a   :  { %v716_v49 = vadd.f32 %v982_v45, %v676_v41  ;;  %v1006_v52 = vpop.f32.mrb[7].mxu1 }
 0x11c   :  { %v756_v53 = vadd.f32 %v1004_v50, %v716_v49 }
 0x11e   :  { %v761_v54 = vmax.f32 %v756_v53, 0.0 }
 0x120   :  { %1022 = vmatmul.mubr.msk.f32.vlgmr.msra.gmra.mrb[8].mxu0 %vm773_vm1, %v761_v54 }
 0x1f3   :  { %v843_v56 = vpop.f32.mrb[8].mxu0 }
 0x1f4   :  { %v844_v57 = vadd.f32 %v918_v55, %v843_v56  ;;  %v1023_v58 = vpop.f32.mrb[9].mxu0 }
 0x1f6   :  { %848 = vst.msk [vmem:[%s1367_s5] sm:$0x3] %vm847_vm2, %v844_v57 }

</bundles_post_ra>
